<compile_context>
chip_gen: v6e
topology: v6e:2x2x1
jax: 0.10.0
libtpu: 0.0.40
codegen_flags: <defaults>
</compile_context>

<pallas_src>
import jax
import jax.numpy as jnp
from jax.experimental import pallas as pl
from jax.experimental.pallas import tpu as pltpu


def _value_net_kernel(xT_ref, w1_ref, b1_ref, w2_ref, b2_ref, o_ref):
    """One batch tile, batch on the lane axis end-to-end.

    xT_ref : [in_size, TILE_B]   lane-dense x tile (only per-step DMA)
    w1_ref : [32, in_size]       fc1.weight (VMEM-resident)
    b1_ref : [32, 1]             fc1.bias as a column (broadcasts over lanes)
    w2_ref : [1, 32]             fc2.weight (VMEM-resident)
    b2_ref : [1]                 fc2.bias scalar (SMEM)
    o_ref  : [1, TILE_B]         lane-dense output tile
    """
    xT = xT_ref[...]                                                   # [in, TILE_B]
    # Layer 1 on the MXU; result is already hidden-major (no relayout needed).
    hT = jnp.dot(w1_ref[...], xT, preferred_element_type=jnp.float32)  # [32, TILE_B]
    hT = jnp.maximum(hT + b1_ref[...], 0.0)                            # bias + ReLU (VPU)
    # Layer 2: clean [1,32] @ [32,TILE_B] matmul -> lane-dense [1, TILE_B].
    y = jnp.dot(w2_ref[...], hT, preferred_element_type=jnp.float32)   # [1, TILE_B]
    o_ref[...] = y + b2_ref[0]                                         # scalar bias from SMEM


# Lane-dense x tile at 16K rows is only in_size*16384*4 B (= 512 KiB at in_size=8),
# so even double-buffered it is far below every generation's VMEM budget.
_MAX_TILE_B = 16384


def _choose_tile_b(batch):
    if batch <= 512:
        # One full-extent block (block dim == array dim, so no 128-alignment needed).
        return batch
    # Lane-aligned (multiple of 128) tiles.  Keep num_tiles >= 2 so both v7x
    # TensorCores get work; v5e/v6e simply benefit from the large tile.
    half = -(-batch // 2)
    tile = ((half + 127) // 128) * 128
    return max(128, min(_MAX_TILE_B, tile))


def value_network_forward(x, w1, b1, w2, b2, *, tile_b=None):
    """x: [B, in_size] f32 -> [B, 1] f32 (matches PyTorch ValueNetwork.forward).

    Parameters use the native PyTorch layouts:
      w1 = fc1.weight [32, in_size], b1 = fc1.bias [32],
      w2 = fc2.weight [1, 32],       b2 = fc2.bias [1].
    """
    x = jnp.asarray(x, jnp.float32)
    w1 = jnp.asarray(w1, jnp.float32)                      # [hidden, in_size]
    hidden, in_size = w1.shape
    b1_col = jnp.asarray(b1, jnp.float32).reshape(hidden, 1)
    w2_row = jnp.asarray(w2, jnp.float32).reshape(1, hidden)
    b2_vec = jnp.asarray(b2, jnp.float32).reshape(1)

    batch = x.shape[0]
    # Feature-major x so the kernel's x stream is lane-dense (one HBM pass).
    xT = x.T                                               # [in_size, B]

    if tile_b is None:
        tile_b = _choose_tile_b(batch)
    num_tiles = -(-batch // tile_b)

    out_row = pl.pallas_call(
        _value_net_kernel,
        out_shape=jax.ShapeDtypeStruct((1, batch), jnp.float32),
        grid=(num_tiles,),
        in_specs=[
            # x_T: the only per-step DMA; lane-dense; Pallas double-buffers it
            # and masks the partial last block (no jnp.pad pass over x).
            pl.BlockSpec((in_size, tile_b), lambda i: (0, i)),
            # Weights / biases: constant index_maps -> fetched once, VMEM-resident.
            pl.BlockSpec((hidden, in_size), lambda i: (0, 0)),
            pl.BlockSpec((hidden, 1), lambda i: (0, 0)),
            pl.BlockSpec((1, hidden), lambda i: (0, 0)),
            # fc2 bias is a single scalar: keep it in SMEM, not a padded VMEM tile.
            pl.BlockSpec(memory_space=pltpu.MemorySpace.SMEM),
        ],
        # Lane-dense output: batch lives on the lane axis of a (1, B) slab.
        out_specs=pl.BlockSpec((1, tile_b), lambda i: (0, i)),
        compiler_params=pltpu.CompilerParams(
            # Batch tiles are independent -> megacore sharding on v7x.
            dimension_semantics=("parallel",),
            # Generous, generation-portable budget (actual use is a few MiB).
            vmem_limit_bytes=32 * 1024 * 1024,
        ),
    )(xT, w1, b1_col, w2_row, b2_vec)

    # Metadata-only layout plumbing back to the PyTorch (B, 1) shape.
    return out_row.reshape(batch, 1)


def init_value_network_params(key, in_size, hidden=32):
    """Mimic PyTorch nn.Linear default init: U(-1/sqrt(fan_in), 1/sqrt(fan_in)).

    Returned in PyTorch layouts: fc1.weight [hidden, in], fc1.bias [hidden],
    fc2.weight [1, hidden], fc2.bias [1].
    """
    k1, k2, k3, k4 = jax.random.split(key, 4)
    bound1 = 1.0 / jnp.sqrt(jnp.float32(in_size))
    bound2 = 1.0 / jnp.sqrt(jnp.float32(hidden))
    w1 = jax.random.uniform(k1, (hidden, in_size), jnp.float32, -bound1, bound1)
    b1 = jax.random.uniform(k2, (hidden,), jnp.float32, -bound1, bound1)
    w2 = jax.random.uniform(k3, (1, hidden), jnp.float32, -bound2, bound2)
    b2 = jax.random.uniform(k4, (1,), jnp.float32, -bound2, bound2)
    return w1, b1, w2, b2


if __name__ == "__main__":
    key = jax.random.PRNGKey(0)
    in_size, hidden = 8, 32

    kp, kx1, kx2 = jax.random.split(key, 3)
    w1, b1, w2, b2 = init_value_network_params(kp, in_size, hidden)

    def reference(xv):
        return jnp.maximum(xv @ w1.T + b1, 0.0) @ w2.T + b2

    # Small batch (single full-extent block), matching the PyTorch module usage.
    x_small = jax.random.normal(kx1, (2, in_size), jnp.float32)
    out_small = jax.block_until_ready(value_network_forward(x_small, w1, b1, w2, b2))
    assert out_small.shape == (2, 1)
    assert jnp.allclose(out_small, reference(x_small), atol=1e-5, rtol=1e-5)

    # Larger batch exercising the multi-tile grid, the lane-dense transposed
    # path and the Pallas-masked partial last block (1000 = 512 + 488).
    x_big = jax.random.normal(kx2, (1000, in_size), jnp.float32)
    out_big = jax.block_until_ready(value_network_forward(x_big, w1, b1, w2, b2))
    assert out_big.shape == (1000, 1)
    assert jnp.allclose(out_big, reference(x_big), atol=1e-5, rtol=1e-5)

    print("KERNEL_OK")
</pallas_src>

<mosaic_0001>
module attributes {stable_mosaic.version = 11 : i64} {
  func.func @_value_net_kernel(%arg0: i32, %arg1: memref<8x2xf32, #tpu.memory_space<vmem>>, %arg2: memref<32x8xf32, #tpu.memory_space<vmem>>, %arg3: memref<32x1xf32, #tpu.memory_space<vmem>>, %arg4: memref<1x32xf32, #tpu.memory_space<vmem>>, %arg5: memref<1xf32, #tpu.memory_space<smem>>, %arg6: memref<1x2xf32, #tpu.memory_space<vmem>>) attributes {dimension_semantics = [#tpu.dimension_semantics<parallel>], iteration_bounds = array<i64: 1>, scalar_prefetch = 0 : i64, scratch_operands = 0 : i64, tpu.core_type = #tpu.core_type<tc>, window_params = [{transform_indices = @transform_0, window_bounds = array<i64: 8, 2>}, {pipeline_mode = #tpu.pipeline_mode<synchronous>, transform_indices = @transform_1, window_bounds = array<i64: 32, 8>}, {pipeline_mode = #tpu.pipeline_mode<synchronous>, transform_indices = @transform_2, window_bounds = array<i64: 32, 1>}, {pipeline_mode = #tpu.pipeline_mode<synchronous>, transform_indices = @transform_3, window_bounds = array<i64: 1, 32>}, {transform_indices = @transform_4, window_bounds = array<i64: 1>}, {transform_indices = @transform_5, window_bounds = array<i64: 1, 2>}]} {
    %c0 = arith.constant 0 : index
    %c0_0 = arith.constant 0 : index
    %0 = vector.load %arg1[%c0, %c0_0] : memref<8x2xf32, #tpu.memory_space<vmem>>, vector<8x2xf32>
    %c0_1 = arith.constant 0 : index
    %c0_2 = arith.constant 0 : index
    %1 = vector.load %arg2[%c0_1, %c0_2] : memref<32x8xf32, #tpu.memory_space<vmem>>, vector<32x8xf32>
    %cst = arith.constant dense<0.000000e+00> : vector<32x2xf32>
    %2 = tpu.matmul %1, %0, %cst {dimension_numbers = #tpu.dot_dimension_numbers<[1], [0], [0], [1], [0, 0, 1, 1], [], []>} : vector<32x8xf32>, vector<8x2xf32>, vector<32x2xf32> -> vector<32x2xf32>
    %c0_3 = arith.constant 0 : index
    %c0_4 = arith.constant 0 : index
    %3 = vector.load %arg3[%c0_3, %c0_4] : memref<32x1xf32, #tpu.memory_space<vmem>>, vector<32x1xf32>
    %4 = vector.broadcast %3 : vector<32x1xf32> to vector<32x2xf32>
    %5 = arith.addf %2, %4 : vector<32x2xf32>
    %cst_5 = arith.constant 0.000000e+00 : f32
    %6 = vector.broadcast %cst_5 : f32 to vector<32x2xf32>
    %7 = arith.maximumf %5, %6 : vector<32x2xf32>
    %c0_6 = arith.constant 0 : index
    %c0_7 = arith.constant 0 : index
    %8 = vector.load %arg4[%c0_6, %c0_7] : memref<1x32xf32, #tpu.memory_space<vmem>>, vector<1x32xf32>
    %cst_8 = arith.constant dense<0.000000e+00> : vector<1x2xf32>
    %9 = tpu.matmul %8, %7, %cst_8 {dimension_numbers = #tpu.dot_dimension_numbers<[1], [0], [0], [1], [0, 0, 1, 1], [], []>} : vector<1x32xf32>, vector<32x2xf32>, vector<1x2xf32> -> vector<1x2xf32>
    %c0_9 = arith.constant 0 : index
    %10 = memref.load %arg5[%c0_9] : memref<1xf32, #tpu.memory_space<smem>>
    %11 = vector.broadcast %10 : f32 to vector<1x2xf32>
    %12 = arith.addf %9, %11 : vector<1x2xf32>
    %c0_10 = arith.constant 0 : index
    %c0_11 = arith.constant 0 : index
    %13 = vector.load %arg6[%c0_10, %c0_11] : memref<1x2xf32, #tpu.memory_space<vmem>>, vector<1x2xf32>
    tpu.vector_store %arg6[%c0_10, %c0_11], %12 {strides = array<i32>} : memref<1x2xf32, #tpu.memory_space<vmem>>, vector<1x2xf32>,
    return
  }
  func.func @transform_0(%arg0: i32) -> (i32, i32) {
    %c0_i32 = arith.constant 0 : i32
    %c0_i32_0 = arith.constant 0 : i32
    return %c0_i32, %arg0 : i32, i32
  }
  func.func @transform_1(%arg0: i32) -> (i32, i32) {
    %c0_i32 = arith.constant 0 : i32
    %c0_i32_0 = arith.constant 0 : i32
    %c0_i32_1 = arith.constant 0 : i32
    return %c0_i32, %c0_i32_0 : i32, i32
  }
  func.func @transform_2(%arg0: i32) -> (i32, i32) {
    %c0_i32 = arith.constant 0 : i32
    %c0_i32_0 = arith.constant 0 : i32
    %c0_i32_1 = arith.constant 0 : i32
    return %c0_i32, %c0_i32_0 : i32, i32
  }
  func.func @transform_3(%arg0: i32) -> (i32, i32) {
    %c0_i32 = arith.constant 0 : i32
    %c0_i32_0 = arith.constant 0 : i32
    %c0_i32_1 = arith.constant 0 : i32
    return %c0_i32, %c0_i32_0 : i32, i32
  }
  func.func @transform_4(%arg0: i32) -> i32 {
    %c0_i32 = arith.constant 0 : i32
    %c0_i32_0 = arith.constant 0 : i32
    return %c0_i32 : i32
  }
  func.func @transform_5(%arg0: i32) -> (i32, i32) {
    %c0_i32 = arith.constant 0 : i32
    %c0_i32_0 = arith.constant 0 : i32
    return %c0_i32, %arg0 : i32, i32
  }
}

</mosaic_0001>

<bundles_post_ra>
// kernel: tpu_custom_call.1
= control target key start
LH: loop header
LB: loop body
LE: loop exit
PB: predicated region body
PF: predicated region fallthrough
CT: control target
= control target key end

     0   :  { %vm51_vm0 = vcmask 64512   ;;  %v308_v5 = vmov 0   ;;  %s382_s0 = inlined_call_operand.vmem [shape: f32[8,2], index: 0, kind: input, shape index: {}]   ;;  %s383_s1 = inlined_call_operand.vmem [shape: f32[32,8], index: 1, kind: input, shape index: {}]   ;;  %s384_s2 = inlined_call_operand.vmem [shape: f32[32,1], index: 2, kind: input, shape index: {}]   ;;  %s385_s3 = inlined_call_operand.vmem [shape: f32[1,32], index: 3, kind: input, shape index: {}]   ;;  %s386_s4 = inlined_call_operand.<no memory space> [shape: f32[1], index: 4, kind: input, shape index: {}]   ;;  %s387_s5 = inlined_call_operand.hbm [shape: f32[1,2], index: 5, kind: output, shape index: {}]  }
   0x1   :  { %v22_v0 = vld [vmem:[%s382_s0] sm:$0xff]  ;;  %v24_v2 = vld [vmem:[%s383_s1 + $0x8] sm:$0xff]  ;;  %v25_v3 = vld [vmem:[%s383_s1 + $0x10] sm:$0xff]  ;;  %285 = vset.pattern.permute.xlu1 %v308_v5  ;;  %284 = vset.pattern.permute.xlu0 %v308_v5 }
   0x2   :  { %v23_v1 = vld [vmem:[%s383_s1] sm:$0xff]  ;;  %261 = vmatprep.subr.mxu0 %v22_v0  ;;  %v30_v4 = vld [vmem:[%s384_s2 + $0x18] sm:$0xff]  ;;  %v28_v6 = vld [vmem:[%s384_s2 + $0x8] sm:$0xff] }
   0x3   :  { %263 = vmatprep.mubr.msk.f32.mxu0 %vm51_vm0, %v23_v1  ;;  %262 = vmatpush3.msra.mxu0 %v22_v0 }
   0x4   :  { %264 = vmatmul.mubr.msk.f32.vlgmr.msra.gmra.mxu0 %vm51_vm0, %v24_v2 }
   0x5   :  { %11 = vsyncpa [#allocation4], 0  ;;  %266 = vmatprep.mubr.msk.f32.mxu0 %vm51_vm0, %v25_v3  ;;  %v26_v7 = vld [vmem:[%s383_s1 + $0x18] sm:$0xff]  ;;  %48 = vperm.xlu0 %284, %v30_v4   ;;  %v29_v8 = vld [vmem:[%s384_s2 + $0x10] sm:$0xff]  ;;  %v309_v10 = vmov 0.0   ;;  %vm310_vm1 = vmmov 0   ;;  %v155_v28 = vstv %s386_s4 }
   0x6   :  { %38 = vperm.xlu1 %285, %v28_v6   ;;  %v27_v9 = vld [vmem:[%s384_s2] sm:$0xff]  ;;  %269 = vmatprep.subr.mxu1 %v309_v10  ;;  %vm156_vm2 = vcmask 261120   ;;  %s311_s12 = smov [#allocation3]   ;;  %vm230_vm3 = vcmask 8192  }
   0x7   :  { %277 = vmatprep.mubr.msk.f32.mxu1 %vm310_vm1, %v309_v10  ;;  %v153_v27 = vld [vmem:[%s385_s3] sm:$0x1]  ;;  %s238_s13 = sshll.u32 %s311_s12, 4  ;;  %s239_s13 = int_to_ptr.vmem [resolvable:$true] %s238_s13 }
   0x8   :  { %267 = vmatmul.mubr.msk.f32.gmra.mxu0 %vm51_vm0, %v26_v7  ;;  %s286_s14 = scalar_lea.vmem %s239_s13, 16  ;;  %s290_s15 = scalar_lea.vmem %s239_s13, 32 }
   0x9   :  { %43 = vperm.xlu0 %284, %v29_v8   ;;  %p287_p0 = scmp.ne.s32.totalorder %s239_s13, %s286_s14  ;;  %p291_p1 = scmp.lt.s32.totalorder %s239_s13, %s239_s13 }
   0xa   :  { %33 = vperm.xlu1 %285, %v27_v9   ;;  %p292_p2 = scmp.lt.s32.totalorder %s290_s15, %s286_s14 }
   0xc   :  { %p293_p3 = por %p292_p2, %p291_p1 }
   0xe   :  { %p294_p4 = pnand %p293_p3, %p287_p0 }
  0x80   :  { %v49_v11 = vpop.permute.xlu0 %48 }
  0x81   :  { %v39_v12 = vpop.permute.xlu1 %38 }
  0x84   :  { %v44_v16 = vpop.permute.xlu0 %43 }
  0x85   :  { %v34_v18 = vpop.permute.xlu1 %33 }
  0xc4   :  { %v265_v13 = vpop.f32.mrf.mxu0 }
  0xc5   :  { %v136_v20 = vadd.f32 %v265_v13, %v39_v12 }
  0xc6   :  { %v130_v14 = vpop.f32.mrf.mxu0 }
  0xc7   :  { %v131_v23 = vadd.f32 %v130_v14, %v34_v18  ;;  %v150_v25 = vmax.f32 %v136_v20, 0.0 }
  0xc8   :  { %v268_v15 = vpop.f32.mrf.mxu0 }
  0xc9   :  { %v146_v17 = vadd.f32 %v268_v15, %v49_v11  ;;  %v149_v26 = vmax.f32 %v131_v23, 0.0 }
  0xca   :  { %v140_v19 = vpop.f32.mrf.mxu0 }
  0xcb   :  { %v152_v21 = vmax.f32 %v146_v17, 0.0  ;;  %v141_v22 = vadd.f32 %v140_v19, %v44_v16 }
  0xcd   :  { %v151_v24 = vmax.f32 %v141_v22, 0.0  ;;  %270 = vmatpush3.msra.mxu1 %v152_v21 }
  0xce   :  { %271 = vmatprep.subr.mxu1 %v309_v10 }
  0xcf   :  { %272 = vmatpush3.msra.mxu1 %v151_v24 }
  0xd0   :  { %273 = vmatprep.subr.mxu1 %v309_v10 }
  0xd1   :  { %274 = vmatpush3.msra.mxu1 %v150_v25 }
  0xd2   :  { %275 = vmatprep.subr.mxu1 %v309_v10 }
  0xd3   :  { %276 = vmatpush3.msra.mxu1 %v149_v26 }
  0xd4   :  { %278 = vmatmul.mubr.msk.f32.vlgmr.msra.gmra.mxu1 %vm156_vm2, %v153_v27 }
 0x194   :  { %v226_v29 = vpop.f32.mrf.mxu1 }
 0x195   :  { %v227_v30 = vadd.f32 %v226_v29, %v155_v28 }
 0x196   :  { %v279_v31 = vpop.f32.mrf.mxu1 }
 0x197   :  { %231 = vst.msk [vmem:[#allocation3] sm:$0x1] %vm230_vm3, %v227_v30 }
 0x198   :  { %297 = shalt.err (!%p294_p4)
}
 0x199   :  { %241 = dma.vmem_to_hbm [thread:$0]  %s239_s13, 16, %s387_s5, [#allocation4]  }
 0x19a   :  { %306 = dma.done.wait [#allocation4], 16  }
 0x19b   :  { %307 = vsyncadd [#allocation4], 4294967280 }
 0x19c   :  { %245 = vsyncpa [#allocation4], 1 }

</bundles_post_ra>
